<compile_context>
chip_gen: v7x
topology: tpu7x:2x2x1
jax: 0.10.0
libtpu: 0.0.40
codegen_flags: <defaults>
</compile_context>

<pallas_src>
import jax
import jax.numpy as jnp
from jax import lax
from jax.experimental import pallas as pl
from jax.experimental.pallas import tpu as pltpu


def _make_kernel(share_values):
    def kernel(*refs):
        if share_values:
            (q_ref, k_ref, m_ref, w_in_ref, w_oc_ref, w_oq_ref,
             wc_ref, mix_ref, p_ref) = refs
            v_ref = k_ref                      # values == keys: single DMA stream
        else:
            (q_ref, k_ref, v_ref, m_ref, w_in_ref, w_oc_ref, w_oq_ref,
             wc_ref, mix_ref, p_ref) = refs

        # In-register f32 upcast (inputs are streamed in their native dtype).
        q = q_ref[...].astype(jnp.float32)          # [TB, H]
        keys = k_ref[...].astype(jnp.float32)       # [TB, L, H]
        mask = m_ref[...].astype(jnp.float32)       # [TB, L] additive (0 / -inf)
        w_in = w_in_ref[...].astype(jnp.float32)    # [H, H]
        w_oc = w_oc_ref[...].astype(jnp.float32)    # [H, H]
        w_oq = w_oq_ref[...].astype(jnp.float32)    # [H, H]

        # decoder_hidden = query @ W_in^T  -> real [TB,H]x[H,H] MXU matmul.
        dh = lax.dot_general(q, w_in, (((1,), (1,)), ((), ())),
                             preferred_element_type=jnp.float32)       # [TB, H]

        # attn_scores[b, l] = sum_h keys[b,l,h] * dh[b,h]
        # (batched matvec -> VPU multiply + lane reduce; keeps the MXU free).
        scores = jnp.sum(keys * dh[:, None, :], axis=-1) + mask        # [TB, L]

        # softmax over L (f32); approx reciprocal goes to the EUP slot.
        m_max = jnp.max(scores, axis=-1, keepdims=True)
        e = jnp.exp(scores - m_max)
        denom = jnp.sum(e, axis=-1, keepdims=True)
        probs = e * pl.reciprocal(denom, approx=True)                  # [TB, L]

        # weighted_context[b, h] = sum_l probs[b,l] * values[b,l,h]
        vals = v_ref[...].astype(jnp.float32)                          # [TB, L, H]
        wc = jnp.sum(vals * probs[:, :, None], axis=1)                 # [TB, H]

        # context_query_mixed = tanh(cat(wc, q) @ W_out^T)
        #                     = tanh(wc @ W_out[:, :H]^T + q @ W_out[:, H:]^T)
        mix = jnp.tanh(
            lax.dot_general(wc, w_oc, (((1,), (1,)), ((), ())),
                            preferred_element_type=jnp.float32)
            + lax.dot_general(q, w_oq, (((1,), (1,)), ((), ())),
                              preferred_element_type=jnp.float32))     # [TB, H]

        wc_ref[...] = wc.astype(wc_ref.dtype)
        mix_ref[...] = mix.astype(mix_ref.dtype)
        p_ref[...] = probs.astype(p_ref.dtype)

    return kernel


def _pick_batch_tile(B, L, H, n_seq_inputs, itemsize):
    """Largest batch tile that keeps per-step VMEM under a budget sized for
    v7x's 64 MiB (also fine on v5e/v6e's 128 MiB)."""
    if B <= 8:
        return B                                  # full batch dim in one block
    budget = 48 * 1024 * 1024
    weights = 3 * H * H * 4                       # constant-index weight blocks
    per_row = 2 * n_seq_inputs * L * H * itemsize # double-buffered keys(/values)
    per_row += 2 * H * itemsize                   # query block
    per_row += 2 * (2 * H + L) * 4                # output blocks
    avail = max(budget - weights, per_row)
    tb = int(min(256, avail // per_row, B))
    tb = max(8, (tb // 8) * 8)                    # sublane-aligned batch tiles
    return tb


def bilinear_attention(query, keys, w_in, w_out, srcmask=None, values=None):
    """query: [B, H]; keys: [B, L, H]; values: [B, L, H] or None;
    srcmask: [B, L] bool (True = masked) or None; w_in: [H, H]; w_out: [H, 2H].

    Returns (weighted_context [B,H], context_query_mixed [B,H], attn_probs [B,L])."""
    B, H = query.shape
    L = keys.shape[1]
    share_values = values is None
    out_dtype = query.dtype

    # Additive mask (0 keep / -inf masked), matching masked_fill(-inf).
    if srcmask is None:
        addmask = jnp.zeros((B, L), jnp.float32)
    else:
        addmask = jnp.where(srcmask, -jnp.inf, 0.0).astype(jnp.float32)

    n_seq_inputs = 1 if share_values else 2
    TB = _pick_batch_tile(B, L, H, n_seq_inputs, jnp.dtype(keys.dtype).itemsize)
    B_pad = ((B + TB - 1) // TB) * TB

    def pad_b(x):
        if B_pad == B:
            return x
        return jnp.pad(x, [(0, B_pad - B)] + [(0, 0)] * (x.ndim - 1))

    operands = [pad_b(query), pad_b(keys)]
    if not share_values:
        operands.append(pad_b(values))
    operands += [pad_b(addmask), w_in, w_out[:, :H], w_out[:, H:]]

    grid = (B_pad // TB,)
    kernel = _make_kernel(share_values)

    def _run(single_buffer_weights):
        if single_buffer_weights:
            # Constant-index weight blocks: one VMEM buffer is enough.
            w_spec = pl.BlockSpec((H, H), lambda b: (0, 0),
                                  pipeline_mode=pl.Buffered(1))
        else:
            w_spec = pl.BlockSpec((H, H), lambda b: (0, 0))

        in_specs = [pl.BlockSpec((TB, H), lambda b: (b, 0)),          # query
                    pl.BlockSpec((TB, L, H), lambda b: (b, 0, 0))]    # keys
        if not share_values:
            in_specs.append(pl.BlockSpec((TB, L, H), lambda b: (b, 0, 0)))  # values
        in_specs += [pl.BlockSpec((TB, L), lambda b: (b, 0)),         # additive mask
                     w_spec, w_spec, w_spec]
        out_specs = [pl.BlockSpec((TB, H), lambda b: (b, 0)),         # weighted_context
                     pl.BlockSpec((TB, H), lambda b: (b, 0)),         # context_query_mixed
                     pl.BlockSpec((TB, L), lambda b: (b, 0))]         # attn_probs

        return pl.pallas_call(
            kernel,
            out_shape=(
                jax.ShapeDtypeStruct((B_pad, H), out_dtype),
                jax.ShapeDtypeStruct((B_pad, H), out_dtype),
                jax.ShapeDtypeStruct((B_pad, L), out_dtype),
            ),
            grid_spec=pltpu.PrefetchScalarGridSpec(
                num_scalar_prefetch=0,
                grid=grid,
                in_specs=in_specs,
                out_specs=out_specs,
            ),
            compiler_params=pltpu.CompilerParams(
                dimension_semantics=("parallel",),   # batch axis: megacore-shardable
                vmem_limit_bytes=64 * 1024 * 1024,
            ),
        )(*operands)

    try:
        wc, mix, probs = _run(True)
    except Exception:   # pipeline_mode / Buffered(1) unsupported -> default buffering
        wc, mix, probs = _run(False)

    return wc[:B], mix[:B], probs[:B]


def _reference(query, keys, w_in, w_out, srcmask=None, values=None):
    if values is None:
        values = keys
    q = query.astype(jnp.float32)
    k = keys.astype(jnp.float32)
    v = values.astype(jnp.float32)
    dh = q @ w_in.astype(jnp.float32).T                      # [B, H]
    scores = jnp.einsum("blh,bh->bl", k, dh)                 # [B, L]
    if srcmask is not None:
        scores = jnp.where(srcmask, -jnp.inf, scores)
    probs = jax.nn.softmax(scores, axis=1)
    wc = jnp.einsum("bl,blh->bh", probs, v)
    mixed = jnp.tanh(jnp.concatenate([wc, q], axis=1) @ w_out.astype(jnp.float32).T)
    return wc, mixed, probs


if __name__ == "__main__":
    B, L, H = 2, 8, 32
    key = jax.random.PRNGKey(0)
    k_q, k_k, k_v, k_m, k_w1, k_w2 = jax.random.split(key, 6)

    query = jax.random.normal(k_q, (B, H), jnp.float32)
    keys = jax.random.normal(k_k, (B, L, H), jnp.float32)
    values = jax.random.normal(k_v, (B, L, H), jnp.float32)
    srcmask = jax.random.bernoulli(k_m, 0.3, (B, L))
    srcmask = srcmask.at[:, 0].set(False)   # keep >=1 unmasked position per row

    # Deterministic "Linear" weights (PyTorch-style shapes: [out, in]).
    bound_in = 1.0 / (H ** 0.5)
    bound_out = 1.0 / ((2 * H) ** 0.5)
    w_in = jax.random.uniform(k_w1, (H, H), jnp.float32, -bound_in, bound_in)
    w_out = jax.random.uniform(k_w2, (H, 2 * H), jnp.float32, -bound_out, bound_out)

    # Path 1: default (values=None -> values == keys, no mask).
    out1 = bilinear_attention(query, keys, w_in, w_out)
    # Path 2: explicit values + srcmask.
    out2 = bilinear_attention(query, keys, w_in, w_out, srcmask=srcmask, values=values)
    jax.block_until_ready((out1, out2))

    ref1 = _reference(query, keys, w_in, w_out)
    ref2 = _reference(query, keys, w_in, w_out, srcmask=srcmask, values=values)

    # approx reciprocal in the softmax -> compare with a slightly looser tolerance.
    names = ("weighted_context", "context_query_mixed", "attn_probs")
    for got, want, name in list(zip(out1, ref1, names)) + list(zip(out2, ref2, names)):
        assert jnp.allclose(got, want, atol=2e-3, rtol=2e-3), f"{name} mismatch"

    print("KERNEL_OK")
</pallas_src>

<mosaic_0001>
module attributes {stable_mosaic.version = 11 : i64} {
  func.func @kernel(%arg0: i32, %arg1: memref<2x32xf32, #tpu.memory_space<vmem>>, %arg2: memref<2x8x32xf32, #tpu.memory_space<vmem>>, %arg3: memref<2x8xf32, #tpu.memory_space<vmem>>, %arg4: memref<32x32xf32, #tpu.memory_space<vmem>>, %arg5: memref<32x32xf32, #tpu.memory_space<vmem>>, %arg6: memref<32x32xf32, #tpu.memory_space<vmem>>, %arg7: memref<2x32xf32, #tpu.memory_space<vmem>>, %arg8: memref<2x32xf32, #tpu.memory_space<vmem>>, %arg9: memref<2x8xf32, #tpu.memory_space<vmem>>) attributes {dimension_semantics = [#tpu.dimension_semantics<parallel>], iteration_bounds = array<i64: 1>, scalar_prefetch = 0 : i64, scratch_operands = 0 : i64, tpu.core_type = #tpu.core_type<tc>, window_params = [{transform_indices = @transform_0, window_bounds = array<i64: 2, 32>}, {transform_indices = @transform_1, window_bounds = array<i64: 2, 8, 32>}, {transform_indices = @transform_2, window_bounds = array<i64: 2, 8>}, {pipeline_mode = #tpu.pipeline_mode<synchronous>, transform_indices = @transform_3, window_bounds = array<i64: 32, 32>}, {pipeline_mode = #tpu.pipeline_mode<synchronous>, transform_indices = @transform_4, window_bounds = array<i64: 32, 32>}, {pipeline_mode = #tpu.pipeline_mode<synchronous>, transform_indices = @transform_5, window_bounds = array<i64: 32, 32>}, {transform_indices = @transform_6, window_bounds = array<i64: 2, 32>}, {transform_indices = @transform_7, window_bounds = array<i64: 2, 32>}, {transform_indices = @transform_8, window_bounds = array<i64: 2, 8>}]} {
    %c0 = arith.constant 0 : index
    %c0_0 = arith.constant 0 : index
    %0 = vector.load %arg1[%c0, %c0_0] : memref<2x32xf32, #tpu.memory_space<vmem>>, vector<2x32xf32>
    %c0_1 = arith.constant 0 : index
    %c0_2 = arith.constant 0 : index
    %c0_3 = arith.constant 0 : index
    %1 = vector.load %arg2[%c0_1, %c0_2, %c0_3] : memref<2x8x32xf32, #tpu.memory_space<vmem>>, vector<2x8x32xf32>
    %c0_4 = arith.constant 0 : index
    %c0_5 = arith.constant 0 : index
    %2 = vector.load %arg3[%c0_4, %c0_5] : memref<2x8xf32, #tpu.memory_space<vmem>>, vector<2x8xf32>
    %c0_6 = arith.constant 0 : index
    %c0_7 = arith.constant 0 : index
    %3 = vector.load %arg4[%c0_6, %c0_7] : memref<32x32xf32, #tpu.memory_space<vmem>>, vector<32x32xf32>
    %c0_8 = arith.constant 0 : index
    %c0_9 = arith.constant 0 : index
    %4 = vector.load %arg5[%c0_8, %c0_9] : memref<32x32xf32, #tpu.memory_space<vmem>>, vector<32x32xf32>
    %c0_10 = arith.constant 0 : index
    %c0_11 = arith.constant 0 : index
    %5 = vector.load %arg6[%c0_10, %c0_11] : memref<32x32xf32, #tpu.memory_space<vmem>>, vector<32x32xf32>
    %cst = arith.constant dense<0.000000e+00> : vector<2x32xf32>
    %6 = tpu.matmul %0, %3, %cst {dimension_numbers = #tpu.dot_dimension_numbers<[1], [1], [0], [0], [0, 0, 1, 0], [], []>} : vector<2x32xf32>, vector<32x32xf32>, vector<2x32xf32> -> vector<2x32xf32>
    %7 = vector.shape_cast %6 : vector<2x32xf32> to vector<2x1x32xf32>
    %8 = vector.broadcast %7 : vector<2x1x32xf32> to vector<2x8x32xf32>
    %9 = arith.mulf %1, %8 : vector<2x8x32xf32>
    %cst_12 = arith.constant dense<0.000000e+00> : vector<2x8xf32>
    %10 = vector.multi_reduction <add>, %9, %cst_12 [2] : vector<2x8x32xf32> to vector<2x8xf32>
    %11 = arith.addf %10, %2 : vector<2x8xf32>
    %cst_13 = arith.constant dense<0xFF800000> : vector<2xf32>
    %12 = vector.multi_reduction <maximumf>, %11, %cst_13 [1] : vector<2x8xf32> to vector<2xf32>
    %13 = vector.shape_cast %12 : vector<2xf32> to vector<2x1xf32>
    %14 = vector.broadcast %13 : vector<2x1xf32> to vector<2x8xf32>
    %15 = arith.subf %11, %14 : vector<2x8xf32>
    %16 = math.exp %15 : vector<2x8xf32>
    %cst_14 = arith.constant dense<0.000000e+00> : vector<2xf32>
    %17 = vector.multi_reduction <add>, %16, %cst_14 [1] : vector<2x8xf32> to vector<2xf32>
    %18 = vector.shape_cast %17 : vector<2xf32> to vector<2x1xf32>
    %19 = tpu.reciprocal %18 {approx = true} : vector<2x1xf32> -> vector<2x1xf32>
    %20 = vector.broadcast %19 : vector<2x1xf32> to vector<2x8xf32>
    %21 = arith.mulf %16, %20 : vector<2x8xf32>
    %c0_15 = arith.constant 0 : index
    %c0_16 = arith.constant 0 : index
    %c0_17 = arith.constant 0 : index
    %22 = vector.load %arg2[%c0_15, %c0_16, %c0_17] : memref<2x8x32xf32, #tpu.memory_space<vmem>>, vector<2x8x32xf32>
    %23 = vector.shape_cast %21 : vector<2x8xf32> to vector<2x8x1xf32>
    %24 = vector.broadcast %23 : vector<2x8x1xf32> to vector<2x8x32xf32>
    %25 = arith.mulf %22, %24 : vector<2x8x32xf32>
    %cst_18 = arith.constant dense<0.000000e+00> : vector<2x32xf32>
    %26 = vector.multi_reduction <add>, %25, %cst_18 [1] : vector<2x8x32xf32> to vector<2x32xf32>
    %cst_19 = arith.constant dense<0.000000e+00> : vector<2x32xf32>
    %27 = tpu.matmul %26, %4, %cst_19 {dimension_numbers = #tpu.dot_dimension_numbers<[1], [1], [0], [0], [0, 0, 1, 0], [], []>} : vector<2x32xf32>, vector<32x32xf32>, vector<2x32xf32> -> vector<2x32xf32>
    %cst_20 = arith.constant dense<0.000000e+00> : vector<2x32xf32>
    %28 = tpu.matmul %0, %5, %cst_20 {dimension_numbers = #tpu.dot_dimension_numbers<[1], [1], [0], [0], [0, 0, 1, 0], [], []>} : vector<2x32xf32>, vector<32x32xf32>, vector<2x32xf32> -> vector<2x32xf32>
    %29 = arith.addf %27, %28 : vector<2x32xf32>
    %30 = math.tanh %29 : vector<2x32xf32>
    %c0_21 = arith.constant 0 : index
    %c0_22 = arith.constant 0 : index
    %31 = vector.load %arg7[%c0_21, %c0_22] : memref<2x32xf32, #tpu.memory_space<vmem>>, vector<2x32xf32>
    tpu.vector_store %arg7[%c0_21, %c0_22], %26 {strides = array<i32>} : memref<2x32xf32, #tpu.memory_space<vmem>>, vector<2x32xf32>,
    %c0_23 = arith.constant 0 : index
    %c0_24 = arith.constant 0 : index
    %32 = vector.load %arg8[%c0_23, %c0_24] : memref<2x32xf32, #tpu.memory_space<vmem>>, vector<2x32xf32>
    tpu.vector_store %arg8[%c0_23, %c0_24], %30 {strides = array<i32>} : memref<2x32xf32, #tpu.memory_space<vmem>>, vector<2x32xf32>,
    %c0_25 = arith.constant 0 : index
    %c0_26 = arith.constant 0 : index
    %33 = vector.load %arg9[%c0_25, %c0_26] : memref<2x8xf32, #tpu.memory_space<vmem>>, vector<2x8xf32>
    tpu.vector_store %arg9[%c0_25, %c0_26], %21 {strides = array<i32>} : memref<2x8xf32, #tpu.memory_space<vmem>>, vector<2x8xf32>,
    return
  }
  func.func @transform_0(%arg0: i32) -> (i32, i32) {
    %c0_i32 = arith.constant 0 : i32
    %c0_i32_0 = arith.constant 0 : i32
    return %arg0, %c0_i32 : i32, i32
  }
  func.func @transform_1(%arg0: i32) -> (i32, i32, i32) {
    %c0_i32 = arith.constant 0 : i32
    %c0_i32_0 = arith.constant 0 : i32
    %c0_i32_1 = arith.constant 0 : i32
    return %arg0, %c0_i32, %c0_i32_0 : i32, i32, i32
  }
  func.func @transform_2(%arg0: i32) -> (i32, i32) {
    %c0_i32 = arith.constant 0 : i32
    %c0_i32_0 = arith.constant 0 : i32
    return %arg0, %c0_i32 : i32, i32
  }
  func.func @transform_3(%arg0: i32) -> (i32, i32) {
    %c0_i32 = arith.constant 0 : i32
    %c0_i32_0 = arith.constant 0 : i32
    %c0_i32_1 = arith.constant 0 : i32
    return %c0_i32, %c0_i32_0 : i32, i32
  }
  func.func @transform_4(%arg0: i32) -> (i32, i32) {
    %c0_i32 = arith.constant 0 : i32
    %c0_i32_0 = arith.constant 0 : i32
    %c0_i32_1 = arith.constant 0 : i32
    return %c0_i32, %c0_i32_0 : i32, i32
  }
  func.func @transform_5(%arg0: i32) -> (i32, i32) {
    %c0_i32 = arith.constant 0 : i32
    %c0_i32_0 = arith.constant 0 : i32
    %c0_i32_1 = arith.constant 0 : i32
    return %c0_i32, %c0_i32_0 : i32, i32
  }
  func.func @transform_6(%arg0: i32) -> (i32, i32) {
    %c0_i32 = arith.constant 0 : i32
    %c0_i32_0 = arith.constant 0 : i32
    return %arg0, %c0_i32 : i32, i32
  }
  func.func @transform_7(%arg0: i32) -> (i32, i32) {
    %c0_i32 = arith.constant 0 : i32
    %c0_i32_0 = arith.constant 0 : i32
    return %arg0, %c0_i32 : i32, i32
  }
  func.func @transform_8(%arg0: i32) -> (i32, i32) {
    %c0_i32 = arith.constant 0 : i32
    %c0_i32_0 = arith.constant 0 : i32
    return %arg0, %c0_i32 : i32, i32
  }
}

module attributes {stable_mosaic.version = 11 : i64} {
  func.func @kernel(%arg0: i32, %arg1: memref<2x32xf32, #tpu.memory_space<vmem>>, %arg2: memref<2x8x32xf32, #tpu.memory_space<vmem>>, %arg3: memref<2x8xf32, #tpu.memory_space<vmem>>, %arg4: memref<32x32xf32, #tpu.memory_space<vmem>>, %arg5: memref<32x32xf32, #tpu.memory_space<vmem>>, %arg6: memref<32x32xf32, #tpu.memory_space<vmem>>, %arg7: memref<2x32xf32, #tpu.memory_space<vmem>>, %arg8: memref<2x32xf32, #tpu.memory_space<vmem>>, %arg9: memref<2x8xf32, #tpu.memory_space<vmem>>) attributes {dimension_semantics = [#tpu.dimension_semantics<parallel>], iteration_bounds = array<i64: 1>, scalar_prefetch = 0 : i64, scratch_operands = 0 : i64, tpu.core_type = #tpu.core_type<tc>, window_params = [{transform_indices = @transform_0, window_bounds = array<i64: 2, 32>}, {transform_indices = @transform_1, window_bounds = array<i64: 2, 8, 32>}, {transform_indices = @transform_2, window_bounds = array<i64: 2, 8>}, {pipeline_mode = #tpu.pipeline_mode<synchronous>, transform_indices = @transform_3, window_bounds = array<i64: 32, 32>}, {pipeline_mode = #tpu.pipeline_mode<synchronous>, transform_indices = @transform_4, window_bounds = array<i64: 32, 32>}, {pipeline_mode = #tpu.pipeline_mode<synchronous>, transform_indices = @transform_5, window_bounds = array<i64: 32, 32>}, {transform_indices = @transform_6, window_bounds = array<i64: 2, 32>}, {transform_indices = @transform_7, window_bounds = array<i64: 2, 32>}, {transform_indices = @transform_8, window_bounds = array<i64: 2, 8>}]} {
    %c0 = arith.constant 0 : index
    %c0_0 = arith.constant 0 : index
    %0 = vector.load %arg1[%c0, %c0_0] : memref<2x32xf32, #tpu.memory_space<vmem>>, vector<2x32xf32>
    %c0_1 = arith.constant 0 : index
    %c0_2 = arith.constant 0 : index
    %c0_3 = arith.constant 0 : index
    %1 = vector.load %arg2[%c0_1, %c0_2, %c0_3] : memref<2x8x32xf32, #tpu.memory_space<vmem>>, vector<2x8x32xf32>
    %c0_4 = arith.constant 0 : index
    %c0_5 = arith.constant 0 : index
    %2 = vector.load %arg3[%c0_4, %c0_5] : memref<2x8xf32, #tpu.memory_space<vmem>>, vector<2x8xf32>
    %c0_6 = arith.constant 0 : index
    %c0_7 = arith.constant 0 : index
    %3 = vector.load %arg4[%c0_6, %c0_7] : memref<32x32xf32, #tpu.memory_space<vmem>>, vector<32x32xf32>
    %c0_8 = arith.constant 0 : index
    %c0_9 = arith.constant 0 : index
    %4 = vector.load %arg5[%c0_8, %c0_9] : memref<32x32xf32, #tpu.memory_space<vmem>>, vector<32x32xf32>
    %c0_10 = arith.constant 0 : index
    %c0_11 = arith.constant 0 : index
    %5 = vector.load %arg6[%c0_10, %c0_11] : memref<32x32xf32, #tpu.memory_space<vmem>>, vector<32x32xf32>
    %cst = arith.constant dense<0.000000e+00> : vector<2x32xf32>
    %6 = tpu.matmul %0, %3, %cst {dimension_numbers = #tpu.dot_dimension_numbers<[1], [1], [0], [0], [0, 0, 1, 0], [], []>} : vector<2x32xf32>, vector<32x32xf32>, vector<2x32xf32> -> vector<2x32xf32>
    %7 = vector.shape_cast %6 : vector<2x32xf32> to vector<2x1x32xf32>
    %8 = vector.broadcast %7 : vector<2x1x32xf32> to vector<2x8x32xf32>
    %9 = arith.mulf %1, %8 : vector<2x8x32xf32>
    %cst_12 = arith.constant dense<0.000000e+00> : vector<2x8xf32>
    %10 = vector.multi_reduction <add>, %9, %cst_12 [2] : vector<2x8x32xf32> to vector<2x8xf32>
    %11 = arith.addf %10, %2 : vector<2x8xf32>
    %cst_13 = arith.constant dense<0xFF800000> : vector<2xf32>
    %12 = vector.multi_reduction <maximumf>, %11, %cst_13 [1] : vector<2x8xf32> to vector<2xf32>
    %13 = vector.shape_cast %12 : vector<2xf32> to vector<2x1xf32>
    %14 = vector.broadcast %13 : vector<2x1xf32> to vector<2x8xf32>
    %15 = arith.subf %11, %14 : vector<2x8xf32>
    %16 = math.exp %15 : vector<2x8xf32>
    %cst_14 = arith.constant dense<0.000000e+00> : vector<2xf32>
    %17 = vector.multi_reduction <add>, %16, %cst_14 [1] : vector<2x8xf32> to vector<2xf32>
    %18 = vector.shape_cast %17 : vector<2xf32> to vector<2x1xf32>
    %19 = tpu.reciprocal %18 {approx = true} : vector<2x1xf32> -> vector<2x1xf32>
    %20 = vector.broadcast %19 : vector<2x1xf32> to vector<2x8xf32>
    %21 = arith.mulf %16, %20 : vector<2x8xf32>
    %c0_15 = arith.constant 0 : index
    %c0_16 = arith.constant 0 : index
    %c0_17 = arith.constant 0 : index
    %22 = vector.load %arg2[%c0_15, %c0_16, %c0_17] : memref<2x8x32xf32, #tpu.memory_space<vmem>>, vector<2x8x32xf32>
    %23 = vector.shape_cast %21 : vector<2x8xf32> to vector<2x8x1xf32>
    %24 = vector.broadcast %23 : vector<2x8x1xf32> to vector<2x8x32xf32>
    %25 = arith.mulf %22, %24 : vector<2x8x32xf32>
    %cst_18 = arith.constant dense<0.000000e+00> : vector<2x32xf32>
    %26 = vector.multi_reduction <add>, %25, %cst_18 [1] : vector<2x8x32xf32> to vector<2x32xf32>
    %cst_19 = arith.constant dense<0.000000e+00> : vector<2x32xf32>
    %27 = tpu.matmul %26, %4, %cst_19 {dimension_numbers = #tpu.dot_dimension_numbers<[1], [1], [0], [0], [0, 0, 1, 0], [], []>} : vector<2x32xf32>, vector<32x32xf32>, vector<2x32xf32> -> vector<2x32xf32>
    %cst_20 = arith.constant dense<0.000000e+00> : vector<2x32xf32>
    %28 = tpu.matmul %0, %5, %cst_20 {dimension_numbers = #tpu.dot_dimension_numbers<[1], [1], [0], [0], [0, 0, 1, 0], [], []>} : vector<2x32xf32>, vector<32x32xf32>, vector<2x32xf32> -> vector<2x32xf32>
    %29 = arith.addf %27, %28 : vector<2x32xf32>
    %30 = math.tanh %29 : vector<2x32xf32>
    %c0_21 = arith.constant 0 : index
    %c0_22 = arith.constant 0 : index
    %31 = vector.load %arg7[%c0_21, %c0_22] : memref<2x32xf32, #tpu.memory_space<vmem>>, vector<2x32xf32>
    tpu.vector_store %arg7[%c0_21, %c0_22], %26 {strides = array<i32>} : memref<2x32xf32, #tpu.memory_space<vmem>>, vector<2x32xf32>,
    %c0_23 = arith.constant 0 : index
    %c0_24 = arith.constant 0 : index
    %32 = vector.load %arg8[%c0_23, %c0_24] : memref<2x32xf32, #tpu.memory_space<vmem>>, vector<2x32xf32>
    tpu.vector_store %arg8[%c0_23, %c0_24], %30 {strides = array<i32>} : memref<2x32xf32, #tpu.memory_space<vmem>>, vector<2x32xf32>,
    %c0_25 = arith.constant 0 : index
    %c0_26 = arith.constant 0 : index
    %33 = vector.load %arg9[%c0_25, %c0_26] : memref<2x8xf32, #tpu.memory_space<vmem>>, vector<2x8xf32>
    tpu.vector_store %arg9[%c0_25, %c0_26], %21 {strides = array<i32>} : memref<2x8xf32, #tpu.memory_space<vmem>>, vector<2x8xf32>,
    return
  }
  func.func @transform_0(%arg0: i32) -> (i32, i32) {
    %c0_i32 = arith.constant 0 : i32
    %c0_i32_0 = arith.constant 0 : i32
    return %arg0, %c0_i32 : i32, i32
  }
  func.func @transform_1(%arg0: i32) -> (i32, i32, i32) {
    %c0_i32 = arith.constant 0 : i32
    %c0_i32_0 = arith.constant 0 : i32
    %c0_i32_1 = arith.constant 0 : i32
    return %arg0, %c0_i32, %c0_i32_0 : i32, i32, i32
  }
  func.func @transform_2(%arg0: i32) -> (i32, i32) {
    %c0_i32 = arith.constant 0 : i32
    %c0_i32_0 = arith.constant 0 : i32
    return %arg0, %c0_i32 : i32, i32
  }
  func.func @transform_3(%arg0: i32) -> (i32, i32) {
    %c0_i32 = arith.constant 0 : i32
    %c0_i32_0 = arith.constant 0 : i32
    %c0_i32_1 = arith.constant 0 : i32
    return %c0_i32, %c0_i32_0 : i32, i32
  }
  func.func @transform_4(%arg0: i32) -> (i32, i32) {
    %c0_i32 = arith.constant 0 : i32
    %c0_i32_0 = arith.constant 0 : i32
    %c0_i32_1 = arith.constant 0 : i32
    return %c0_i32, %c0_i32_0 : i32, i32
  }
  func.func @transform_5(%arg0: i32) -> (i32, i32) {
    %c0_i32 = arith.constant 0 : i32
    %c0_i32_0 = arith.constant 0 : i32
    %c0_i32_1 = arith.constant 0 : i32
    return %c0_i32, %c0_i32_0 : i32, i32
  }
  func.func @transform_6(%arg0: i32) -> (i32, i32) {
    %c0_i32 = arith.constant 0 : i32
    %c0_i32_0 = arith.constant 0 : i32
    return %arg0, %c0_i32 : i32, i32
  }
  func.func @transform_7(%arg0: i32) -> (i32, i32) {
    %c0_i32 = arith.constant 0 : i32
    %c0_i32_0 = arith.constant 0 : i32
    return %arg0, %c0_i32 : i32, i32
  }
  func.func @transform_8(%arg0: i32) -> (i32, i32) {
    %c0_i32 = arith.constant 0 : i32
    %c0_i32_0 = arith.constant 0 : i32
    return %arg0, %c0_i32 : i32, i32
  }
}

</mosaic_0001>

<bundles_post_ra>
// kernel: tpu_custom_call.1
= control target key start
LH: loop header
LB: loop body
LE: loop exit
PB: predicated region body
PF: predicated region fallthrough
CT: control target
= control target key end

     0   :  { %14 = vsyncpa [#allocation3], 0  ;;  %s1185_s0 = inlined_call_operand.hbm [shape: f32[2,32], index: 0, kind: input, shape index: {}]   ;;  %s1186_s1 = inlined_call_operand.hbm [shape: f32[2,8,32], index: 1, kind: input, shape index: {}]   ;;  %s1187_s2 = inlined_call_operand.hbm [shape: f32[2,8], index: 2, kind: input, shape index: {}]   ;;  %s1188_s3 = inlined_call_operand.hbm [shape: f32[32,32], index: 3, kind: input, shape index: {}]   ;;  %s1189_s4 = inlined_call_operand.hbm [shape: f32[32,32], index: 4, kind: input, shape index: {}]   ;;  %s1190_s5 = inlined_call_operand.hbm [shape: f32[32,32], index: 5, kind: input, shape index: {}]   ;;  %s1191_s6 = inlined_call_operand.hbm [shape: f32[2,32], index: 6, kind: output, shape index: {0}]   ;;  %s1192_s7 = inlined_call_operand.hbm [shape: f32[2,32], index: 7, kind: output, shape index: {1}]   ;;  %s1193_s8 = inlined_call_operand.hbm [shape: f32[2,8], index: 8, kind: output, shape index: {2}]  }
   0x1   :  { %15 = vsyncpa [#allocation6], 0 }
   0x2   :  { %16 = vsyncpa [#allocation9], 0 }
   0x3   :  { %17 = vsyncpa [#allocation12], 0 }
   0x4   :  { %18 = vsyncpa [#allocation4], 0 }
   0x5   :  { %19 = vsyncpa [#allocation15], 0  ;;  %s926_s27 = smov [#allocation5]   ;;  %s716_s9 = scalar_lea.hbm %s1186_s1, 256 }
   0x6   :  { %s35_s28 = sshll.u32 %s926_s27, 4  ;;  %p717_p0 = scmp.ne.s32.totalorder %s1186_s1, %s716_s9  ;;  %s36_s28 = int_to_ptr.vmem [resolvable:$true] %s35_s28 }
   0x7   :  { %p720_p1 = scmp.lt.u32.totalorder %s716_s9, %s1186_s1 }
   0x9   :  { %p722_p2 = pnand %p720_p1, %p717_p0 }
   0xb   :  { %725 = shalt.err (!%p722_p2)
}
   0xc   :  { %s726_s14 = scalar_lea.vmem %s36_s28, 256  ;;  %p731_p4 = scmp.lt.s32.totalorder %s36_s28, %s36_s28 }
   0xd   :  { %p727_p3 = scmp.ne.s32.totalorder %s36_s28, %s726_s14  ;;  %p732_p5 = scmp.lt.s32.totalorder %s726_s14, %s726_s14 }
   0xf   :  { %p733_p6 = por %p732_p5, %p731_p4 }
  0x11   :  { %p734_p7 = pnand %p733_p6, %p727_p3 }
  0x13   :  { %737 = shalt.err (!%p734_p7)
}
  0x14   :  { %s927_s15 = smov 128   ;;  %s928_s16 = smov 8  }
  0x15   :  { %41 = dma.hbm_to_vmem [thread:$0]  %s1186_s1, 256, %s36_s28, [#allocation6], %s927_s15, %s927_s15, %s928_s16  }
  0x16   :  { %s929_s19 = smov [#allocation8]   ;;  %s930_s21 = smov [#allocation2]  }
  0x17   :  { %s57_s20 = sshll.u32 %s929_s19, 4  ;;  %s26_s22 = sshll.u32 %s930_s21, 4  ;;  %s58_s20 = int_to_ptr.vmem [resolvable:$true] %s57_s20  ;;  %s27_s22 = int_to_ptr.vmem [resolvable:$true] %s26_s22 }
  0x18   :  { %s738_s25 = scalar_lea.hbm %s1188_s3, 512 }
  0x19   :  { %p739_p8 = scmp.ne.s32.totalorder %s1188_s3, %s738_s25  ;;  %p742_p9 = scmp.lt.u32.totalorder %s738_s25, %s1188_s3 }
  0x1b   :  { %p744_p10 = pnand %p742_p9, %p739_p8 }
  0x1d   :  { %747 = shalt.err (!%p744_p10)
}
  0x1e   :  { %s748_s1 = scalar_lea.vmem %s58_s20, 512  ;;  %p753_p12 = scmp.lt.s32.totalorder %s58_s20, %s58_s20 }
  0x1f   :  { %p749_p11 = scmp.ne.s32.totalorder %s58_s20, %s748_s1  ;;  %p754_p13 = scmp.lt.s32.totalorder %s748_s1, %s748_s1 }
  0x21   :  { %p755_p0 = por %p754_p13, %p753_p12 }
  0x23   :  { %p756_p1 = pnand %p755_p0, %p749_p11 }
  0x25   :  { %759 = shalt.err (!%p756_p1)
}
  0x26   :  { %63 = dma.hbm_to_vmem [thread:$0]  %s1188_s3, 512, %s58_s20, [#allocation9], %s927_s15, %s927_s15, %s928_s16  }
  0x27   :  { %s760_s12 = scalar_lea.hbm %s1185_s0, 32 }
  0x28   :  { %p761_p2 = scmp.ne.s32.totalorder %s1185_s0, %s760_s12  ;;  %p764_p3 = scmp.lt.u32.totalorder %s760_s12, %s1185_s0 }
  0x2a   :  { %p766_p4 = pnand %p764_p3, %p761_p2 }
  0x2c   :  { %769 = shalt.err (!%p766_p4)
}
  0x2d   :  { %s770_s19 = scalar_lea.vmem %s27_s22, 32  ;;  %p775_p6 = scmp.lt.s32.totalorder %s27_s22, %s27_s22 }
  0x2e   :  { %p771_p5 = scmp.ne.s32.totalorder %s27_s22, %s770_s19  ;;  %p776_p7 = scmp.lt.s32.totalorder %s770_s19, %s770_s19 }
  0x30   :  { %p777_p8 = por %p776_p7, %p775_p6 }
  0x32   :  { %p778_p9 = pnand %p777_p8, %p771_p5 }
  0x34   :  { %781 = shalt.err (!%p778_p9)
}
  0x35   :  { %29 = dma.hbm_to_vmem [thread:$0]  %s1185_s0, 32, %s27_s22, [#allocation3]  }
  0x36   :  { %s931_s21 = smov [#allocation7]   ;;  %s932_s24 = smov [#allocation10]  }
  0x37   :  { %s48_s23 = sshll.u32 %s931_s21, 4  ;;  %s69_s25 = sshll.u32 %s932_s24, 4  ;;  %s49_s23 = int_to_ptr.vmem [resolvable:$true] %s48_s23  ;;  %s70_s25 = int_to_ptr.vmem [resolvable:$true] %s69_s25 }
  0x38   :  { %s782_s29 = scalar_lea.hbm %s1187_s2, 32 }
  0x39   :  { %p783_p10 = scmp.ne.s32.totalorder %s1187_s2, %s782_s29  ;;  %p786_p11 = scmp.lt.u32.totalorder %s782_s29, %s1187_s2 }
  0x3b   :  { %p788_p12 = pnand %p786_p11, %p783_p10 }
  0x3d   :  { %791 = shalt.err (!%p788_p12)
}
  0x3e   :  { %s792_s0 = scalar_lea.vmem %s49_s23, 32  ;;  %p797_p0 = scmp.lt.s32.totalorder %s49_s23, %s49_s23 }
  0x3f   :  { %p793_p13 = scmp.ne.s32.totalorder %s49_s23, %s792_s0  ;;  %p798_p1 = scmp.lt.s32.totalorder %s792_s0, %s792_s0 }
  0x41   :  { %p799_p2 = por %p798_p1, %p797_p0 }
  0x43   :  { %p800_p3 = pnand %p799_p2, %p793_p13 }
  0x45   :  { %803 = shalt.err (!%p800_p3)
}
  0x46   :  { %51 = dma.hbm_to_vmem [thread:$0]  %s1187_s2, 32, %s49_s23, [#allocation6]  }
  0x47   :  { %s804_s13 = scalar_lea.hbm %s1189_s4, 512 }
  0x48   :  { %p805_p4 = scmp.ne.s32.totalorder %s1189_s4, %s804_s13  ;;  %p808_p5 = scmp.lt.u32.totalorder %s804_s13, %s1189_s4 }
  0x4a   :  { %p810_p6 = pnand %p808_p5, %p805_p4 }
  0x4c   :  { %813 = shalt.err (!%p810_p6)
}
  0x4d   :  { %s814_s3 = scalar_lea.vmem %s70_s25, 512  ;;  %p819_p8 = scmp.lt.s32.totalorder %s70_s25, %s70_s25 }
  0x4e   :  { %p815_p7 = scmp.ne.s32.totalorder %s70_s25, %s814_s3  ;;  %p820_p9 = scmp.lt.s32.totalorder %s814_s3, %s814_s3 }
  0x50   :  { %p821_p10 = por %p820_p9, %p819_p8 }
  0x52   :  { %p822_p11 = pnand %p821_p10, %p815_p7 }
  0x54   :  { %825 = shalt.err (!%p822_p11)
}
  0x55   :  { %75 = dma.hbm_to_vmem [thread:$0]  %s1189_s4, 512, %s70_s25, [#allocation9], %s927_s15, %s927_s15, %s928_s16  }
  0x56   :  { %s933_s21 = smov [#allocation11]   ;;  %s826_s27 = scalar_lea.hbm %s1190_s5, 512 }
  0x57   :  { %s81_s23 = sshll.u32 %s933_s21, 4  ;;  %p827_p12 = scmp.ne.s32.totalorder %s1190_s5, %s826_s27  ;;  %s82_s23 = int_to_ptr.vmem [resolvable:$true] %s81_s23 }
  0x58   :  { %p830_p13 = scmp.lt.u32.totalorder %s826_s27, %s1190_s5 }
  0x5a   :  { %p832_p0 = pnand %p830_p13, %p827_p12 }
  0x5c   :  { %835 = shalt.err (!%p832_p0)
}
  0x5d   :  { %s836_s9 = scalar_lea.vmem %s82_s23, 512  ;;  %p841_p2 = scmp.lt.s32.totalorder %s82_s23, %s82_s23 }
  0x5e   :  { %p837_p1 = scmp.ne.s32.totalorder %s82_s23, %s836_s9  ;;  %p842_p3 = scmp.lt.s32.totalorder %s836_s9, %s836_s9 }
  0x60   :  { %p843_p4 = por %p842_p3, %p841_p2 }
  0x62   :  { %p844_p5 = pnand %p843_p4, %p837_p1 }
  0x64   :  { %847 = shalt.err (!%p844_p5)
}
  0x65   :  { %87 = dma.hbm_to_vmem [thread:$0]  %s1190_s5, 512, %s82_s23, [#allocation12], %s927_s15, %s927_s15, %s928_s16  }
  0x66   :  { %914 = dma.done.wait [#allocation3], 32  }
  0x67   :  { %915 = vsyncadd [#allocation3], 4294967264 }
  0x68   :  { %916 = dma.done.wait [#allocation6], 288  }
  0x69   :  { %917 = vsyncadd [#allocation6], 4294967008 }
  0x6a   :  { %918 = dma.done.wait [#allocation9], 1024  }
  0x6b   :  { %919 = vsyncadd [#allocation9], 4294966272 }
  0x6c   :  { %920 = dma.done.wait [#allocation12], 512  }
  0x6d   :  { %921 = vsyncadd [#allocation12], 4294966784  ;;  %v934_v0 = vmov 0.0|0.0   ;;  %vm935_vm0 = vmmov 0   ;;  %v936_v1 = vmov 0.0   ;;  %vm122_vm1 = vcmask 261120  }
  0x6e   :  { %664 = vmatprep.subr.bf16.mxu0 %v934_v0  ;;  %639 = vmatprep.mubr.msk.f32.mxu0 %vm935_vm0, %v936_v1  ;;  %v110_v2 = vld [vmem:[#allocation8] sm:$0xff]  ;;  %v111_v3 = vld [vmem:[#allocation8 + $0x8] sm:$0xff]  ;;  %vm1079_vm2 = vmpackc.low %vm122_vm1, %vm122_vm1  ;;  %v212_v10 = vlaneseq  ;;  %v937_v17 = vmov 1966171168   ;;  %v938_v35 = vmov 0   ;;  %vm286_vm3 = vcmask 1041409  }
  0x6f   :  { %672 = vmatprep.subr.bf16.mxu1 %v934_v0  ;;  %650 = vmatprep.mubr.msk.f32.mxu1 %vm935_vm0, %v936_v1  ;;  %v665_v5 = vpack.c.bf16 %v111_v3, %v110_v2  ;;  %v112_v6 = vld [vmem:[#allocation8 + $0x10] sm:$0xff]  ;;  %v113_v7 = vld [vmem:[#allocation8 + $0x18] sm:$0xff]  ;;  %v1088_v9 = vld [vmem:[#allocation2] sm:$0x3]  ;;  %v210_v18 = vunpack.c.l.s4 %v937_v17  ;;  %vm289_vm4 = vcmask 58368   ;;  %vm542_vm5 = vcmask 254976  }
  0x70   :  { %v669_v8 = vpack.c.bf16 %v113_v7, %v112_v6  ;;  %v213_v11 = vshrl.u32 %v212_v10, 7  ;;  %v109_v13 = vld [vmem:[#allocation7] sm:$0x3]  ;;  %v1098_v26 = vld [vmem:[#allocation5] sm:$0xff]  ;;  %v1101_v29 = vld [vmem:[#allocation5 + $0x8] sm:$0xff]  ;;  %706 = vset.pattern.permute.xlu0 %v938_v35  ;;  %707 = vset.pattern.permute.xlu1 %v938_v35  ;;  %v277_v42 = vand.u32 127, %v212_v10 }
  0x71   :  { %667 = vmatpush3.bf16.xpose.msk.msra.mxu0 %vm1079_vm2, %v665_v5  ;;  %v211_v19 = vunpack.c.0.s8 %v210_v18  ;;  %v118_v3 = vld [vmem:[#allocation11] sm:$0xff]  ;;  %v119_v5 = vld [vmem:[#allocation11 + $0x8] sm:$0xff]  ;;  %v120_v7 = vld [vmem:[#allocation11 + $0x10] sm:$0xff]  ;;  %s939_s5 = smov [#allocation13]  }
  0x72   :  { %668 = vmatprep.subr.bf16.mxu0 %v934_v0  ;;  %v1092_v12 = vsub.s32 0, %v213_v11  ;;  %v1094_v14 = vsub.s32 1, %v213_v11  ;;  %v1108_v43 = vsub.s32 %v277_v42, %v213_v11  ;;  %v673_v6 = vpack.c.bf16 %v119_v5, %v118_v3  ;;  %s562_s15 = sshll.u32 %s939_s5, 4  ;;  %s563_s15 = int_to_ptr.vmem [resolvable:$true] %s562_s15 }
  0x73   :  { %v214_v20 = vsub.s32 %v211_v19, %v213_v11  ;;  %v114_v19 = vld [vmem:[#allocation10] sm:$0xff]  ;;  %s848_s16 = scalar_lea.vmem %s563_s15, 32  ;;  %p853_p7 = scmp.lt.s32.totalorder %s563_s15, %s563_s15 }
  0x74   :  { %v253_v15 = vrot.slane %v109_v13, %v1092_v12  ;;  %v260_v16 = vrot.slane %v109_v13, %v1094_v14  ;;  %675 = vmatpush3.bf16.xpose.msk.msra.mxu1 %vm1079_vm2, %v673_v6  ;;  %p849_p6 = scmp.ne.s32.totalorder %s563_s15, %s848_s16  ;;  %p854_p8 = scmp.lt.s32.totalorder %s848_s16, %s848_s16 }
  0x75   :  { %676 = vmatprep.subr.bf16.mxu1 %v934_v0 }
  0x76   :  { %255 = vbcast.lane.b32.xlu1 %v253_v15, 256  ;;  %p855_p9 = por %p854_p8, %p853_p7 }
  0x78   :  { %p856_p10 = pnand %p855_p9, %p849_p6 }
  0x79   :  { %671 = vmatpush3.bf16.xpose.msk.msra.mxu0 %vm1079_vm2, %v669_v8  ;;  %v121_v8 = vld [vmem:[#allocation11 + $0x18] sm:$0xff] }
  0x7a   :  { %262 = vbcast.lane.b32.xlu1 %v260_v16, 256  ;;  %v677_v10 = vpack.c.bf16 %v121_v8, %v120_v7 }
  0x7c   :  { %679 = vmatpush3.bf16.xpose.msk.msra.mxu1 %vm1079_vm2, %v677_v10 }
  0x7d   :  { %680 = vmatprep.subr.bf16.mxu1 %v934_v0 }
  0x80   :  { %640 = vmatmul.mubr.msk.f32.vlgmr.msra.gmra.mrb[0].mxu0 %vm122_vm1, %v1088_v9 }
  0x83   :  { %651 = vmatmul.mubr.msk.f32.vlgmr.msra.gmra.mrb[0].mxu1 %vm122_vm1, %v1088_v9  ;;  %v117_v9 = vld [vmem:[#allocation10 + $0x18] sm:$0xff] }
  0x84   :  { %661 = vmatprep.mubr.msk.f32.mxu1 %vm935_vm0, %v936_v1  ;;  %v116_v1 = vld [vmem:[#allocation10 + $0x10] sm:$0xff] }
  0xe8   :  { %v256_v36 = vpop.permute.xlu1 %255 }
  0xec   :  { %v263_v39 = vpop.permute.xlu1 %262 }
 0x153   :  { %v204_v21 = vpop.f32.mrb[0].mxu0 }
 0x154   :  { %v215_v22 = vrot.slane %v204_v21, %v214_v20  ;;  %v641_v23 = vpop.f32.mrb[1].mxu0 }
 0x156   :  { %v216_v24 = vcombine.high %v215_v22, %v215_v22  ;;  %v223_v25 = vrot.slane %v215_v22, %v214_v20  ;;  %v685_v22 = vpack.c.bf16 %v117_v9, %v116_v1 }
 0x158   :  { %v230_v27 = vrot.slane %v216_v24, %v214_v20  ;;  %v234_v28 = vrot.slane %v223_v25, %v1092_v12  ;;  %v115_v20 = vld [vmem:[#allocation10 + $0x8] sm:$0xff] }
 0x159   :  { %v681_v21 = vpack.c.bf16 %v115_v20, %v114_v19 }
 0x15a   :  { %v241_v30 = vmul.f32 %v234_v28, %v1098_v26  ;;  %v238_v31 = vrot.slane %v230_v27, %v1092_v12 }
 0x15b   :  { %683 = vmatpush3.bf16.xpose.msk.msra.mxu1 %vm1079_vm2, %v681_v21 }
 0x15c   :  { %v243_v32 = vsel %vm122_vm1, %v241_v30, 0.0  ;;  %v242_v33 = vmul.f32 %v238_v31, %v1101_v29  ;;  %684 = vmatprep.subr.bf16.mxu1 %v934_v0 }
 0x15d   :  { %244 = vadd.xlane.f32.xlu0 %v243_v32 }
 0x15e   :  { %v246_v34 = vsel %vm122_vm1, %v242_v33, 0.0 }
 0x161   :  { %247 = vadd.xlane.f32.xlu0 %v246_v34 }
 0x163   :  { %687 = vmatpush3.bf16.xpose.msk.msra.mxu1 %vm1079_vm2, %v685_v22 }
 0x1ea   :  { %v245_v37 = vpop.xlane.xlu0 %244 }
 0x1eb   :  { %v266_v38 = vadd.f32 %v256_v36, %v245_v37 }
 0x1ed   :  { %271 = vperm.xlu0 %706, %v266_v38  }
 0x1ee   :  { %v248_v40 = vpop.xlane.xlu0 %247 }
 0x1ef   :  { %v267_v41 = vadd.f32 %v263_v39, %v248_v40 }
 0x1f1   :  { %274 = vperm.xlu1 %707, %v267_v41  }
 0x26c   :  { %v272_v44 = vpop.permute.xlu0 %271 }
 0x26d   :  { %v281_v46 = vrot.slane %v272_v44, %v1108_v43 }
 0x270   :  { %v275_v45 = vpop.permute.xlu1 %274 }
 0x271   :  { %v285_v47 = vrot.slane %v275_v45, %v1108_v43 }
 0x273   :  { %v287_v48 = vsel %vm286_vm3, %v285_v47, %v281_v46 }
 0x274   :  { %v290_v49 = vsel %vm289_vm4, %v287_v48, -inf }
 0x275   :  { %291 = vmax.xlane.f32.xlu1 %v290_v49 }
 0x302   :  { %v292_v50 = vpop.xlane.xlu1 %291 }
 0x303   :  { %v297_v51 = vrot.slane %v292_v50, %v1092_v12  ;;  %v301_v52 = vrot.slane %v292_v50, %v1094_v14 }
 0x305   :  { %v304_v53 = vsub.f32 %v266_v38, %v297_v51  ;;  %v305_v54 = vsub.f32 %v267_v41, %v301_v52 }
 0x307   :  { %v306_v55 = vmul.f32 1.442695, %v304_v53  ;;  %v308_v56 = vmul.f32 1.442695, %v305_v54 }
 0x309   :  { %708 = vpow2.f32 %v306_v55 }
 0x30a   :  { %710 = vpow2.f32 %v308_v56 }
 0x313   :  { %v709_v57 = vpop.eup %708 }
 0x314   :  { %v711_v58 = vpop.eup %710  ;;  %313 = vperm.xlu1 %707, %v709_v57  }
 0x315   :  { %316 = vperm.xlu0 %706, %v711_v58  }
 0x393   :  { %v314_v59 = vpop.permute.xlu1 %313 }
 0x394   :  { %v317_v60 = vpop.permute.xlu0 %316  ;;  %v321_v61 = vrot.slane %v314_v59, %v1108_v43 }
 0x395   :  { %v325_v62 = vrot.slane %v317_v60, %v1108_v43 }
 0x397   :  { %v326_v63 = vsel %vm286_vm3, %v325_v62, %v321_v61 }
 0x398   :  { %v328_v2 = vsel %vm289_vm4, %v326_v63, 0.0 }
 0x399   :  { %329 = vadd.xlane.f32.xlu0 %v328_v2 }
 0x426   :  { %v330_v11 = vpop.xlane.xlu0 %329 }
 0x427   :  { %712 = vrcp.f32 %v330_v11 }
 0x431   :  { %v713_v13 = vpop.eup %712 }
 0x432   :  { %v336_v15 = vrot.slane %v713_v13, %v1092_v12  ;;  %v340_v17 = vrot.slane %v713_v13, %v1094_v14 }
 0x434   :  { %v343_v16 = vmul.f32 %v709_v57, %v336_v15  ;;  %v344_v18 = vmul.f32 %v711_v58, %v340_v17 }
 0x436   :  { %347 = vperm.xlu1 %707, %v343_v16  }
 0x43a   :  { %352 = vperm.xlu1 %707, %v344_v18  }
 0x4b5   :  { %v348_v12 = vpop.permute.xlu1 %347 }
 0x4b6   :  { %v355_v14 = vmul.f32 %v348_v12, %v1098_v26  ;;  %v548_v27 = vrot.slane %v348_v12, %v1108_v43 }
 0x4b8   :  { %v357_v23 = vsel %vm122_vm1, %v355_v14, 0.0 }
 0x4b9   :  { %v358_v24 = vrot.slane %v357_v23, 4  ;;  %v353_v25 = vpop.permute.xlu1 %352 }
 0x4ba   :  { %v356_v28 = vmul.f32 %v353_v25, %v1101_v29  ;;  %v552_v30 = vrot.slane %v353_v25, %v1108_v43 }
 0x4bb   :  { %v359_v0 = vadd.f32 %v358_v24, %v357_v23 }
 0x4bc   :  { %v364_v31 = vsel %vm122_vm1, %v356_v28, 0.0  ;;  %v553_v32 = vsel %vm286_vm3, %v552_v30, %v548_v27 }
 0x4bd   :  { %v360_v4 = vrot.slane %v359_v0, 2  ;;  %v365_v33 = vrot.slane %v364_v31, 4  ;;  %555 = vst.msk [vmem:[#allocation16] sm:$0x3] %vm289_vm4, %v553_v32 }
 0x4bf   :  { %v361_v26 = vadd.f32 %v360_v4, %v359_v0  ;;  %v366_v34 = vadd.f32 %v365_v33, %v364_v31 }
 0x4c1   :  { %v367_v35 = vrot.slane %v366_v34, 2  ;;  %v362_v36 = vrot.slane %v361_v26, 1 }
 0x4c3   :  { %v368_v37 = vadd.f32 %v367_v35, %v366_v34  ;;  %v363_v39 = vadd.f32 %v362_v36, %v361_v26 }
 0x4c5   :  { %v369_v38 = vrot.slane %v368_v37, 1 }
 0x4c7   :  { %v370_v40 = vadd.f32 %v369_v38, %v368_v37 }
 0x4c9   :  { %v455_v29 = vsel %vm286_vm3, %v370_v40, %v363_v39 }
 0x4ca   :  { %662 = vmatmul.mubr.msk.f32.vlgmr.msra.gmra.mrb[0].mxu1 %vm122_vm1, %v455_v29  ;;  %543 = vst.msk [vmem:[#allocation13] sm:$0x3] %vm542_vm5, %v455_v29 }
 0x4cb   :  { %859 = shalt.err (!%p856_p10)
}
 0x4cc   :  { %s860_s10 = scalar_lea.hbm %s1191_s6, 32 }
 0x4cd   :  { %p861_p11 = scmp.ne.s32.totalorder %s1191_s6, %s860_s10  ;;  %p864_p12 = scmp.lt.u32.totalorder %s860_s10, %s1191_s6 }
 0x4cf   :  { %p866_p13 = pnand %p864_p12, %p861_p11 }
 0x4d1   :  { %869 = shalt.err (!%p866_p13)
}
 0x4d2   :  { %565 = dma.vmem_to_hbm [thread:$0]  %s563_s15, 32, %s1191_s6, [#allocation4]  }
 0x4d3   :  { %s940_s19 = smov [#allocation14]   ;;  %s941_s2 = smov [#allocation16]  }
 0x4d4   :  { %s572_s3 = sshll.u32 %s940_s19, 4  ;;  %s582_s20 = sshll.u32 %s941_s2, 4  ;;  %s573_s3 = int_to_ptr.vmem [resolvable:$true] %s572_s3  ;;  %s583_s20 = int_to_ptr.vmem [resolvable:$true] %s582_s20 }
 0x4d5   :  { %s870_s21 = scalar_lea.vmem %s573_s3, 32  ;;  %p875_p1 = scmp.lt.s32.totalorder %s573_s3, %s573_s3 }
 0x4d6   :  { %p871_p0 = scmp.ne.s32.totalorder %s573_s3, %s870_s21  ;;  %p876_p2 = scmp.lt.s32.totalorder %s870_s21, %s870_s21 }
 0x4d8   :  { %p877_p3 = por %p876_p2, %p875_p1 }
 0x4da   :  { %p878_p4 = pnand %p877_p3, %p871_p0 }
 0x59d   :  { %v536_v41 = vpop.f32.mrb[0].mxu1 }
 0x59e   :  { %714 = vtanh.f32 %v536_v41  ;;  %v663_v42 = vpop.f32.mrb[1].mxu1 }
 0x5a8   :  { %v715_v43 = vpop.eup %714 }
 0x5a9   :  { %544 = vst.msk [vmem:[#allocation14] sm:$0x3] %vm542_vm5, %v715_v43 }
 0x5aa   :  { %881 = shalt.err (!%p878_p4)
}
 0x5ab   :  { %s882_s24 = scalar_lea.hbm %s1192_s7, 32 }
 0x5ac   :  { %p883_p5 = scmp.ne.s32.totalorder %s1192_s7, %s882_s24  ;;  %p886_p6 = scmp.lt.u32.totalorder %s882_s24, %s1192_s7 }
 0x5ae   :  { %p888_p7 = pnand %p886_p6, %p883_p5 }
 0x5b0   :  { %891 = shalt.err (!%p888_p7)
}
 0x5b1   :  { %575 = dma.vmem_to_hbm [thread:$0]  %s573_s3, 32, %s1192_s7, [#allocation15]  }
 0x5b2   :  { %s892_s9 = scalar_lea.vmem %s583_s20, 32  ;;  %p897_p9 = scmp.lt.s32.totalorder %s583_s20, %s583_s20 }
 0x5b3   :  { %p893_p8 = scmp.ne.s32.totalorder %s583_s20, %s892_s9  ;;  %p898_p10 = scmp.lt.s32.totalorder %s892_s9, %s892_s9 }
 0x5b5   :  { %p899_p11 = por %p898_p10, %p897_p9 }
 0x5b7   :  { %p900_p12 = pnand %p899_p11, %p893_p8 }
 0x5b9   :  { %903 = shalt.err (!%p900_p12)
}
 0x5ba   :  { %s904_s5 = scalar_lea.hbm %s1193_s8, 32 }
 0x5bb   :  { %p905_p13 = scmp.ne.s32.totalorder %s1193_s8, %s904_s5  ;;  %p908_p0 = scmp.lt.u32.totalorder %s904_s5, %s1193_s8 }
 0x5bd   :  { %p910_p1 = pnand %p908_p0, %p905_p13 }
 0x5bf   :  { %913 = shalt.err (!%p910_p1)
}
 0x5c0   :  { %585 = dma.vmem_to_hbm [thread:$0]  %s583_s20, 32, %s1193_s8, [#allocation15]  }
 0x5c1   :  { %922 = dma.done.wait [#allocation4], 32  }
 0x5c2   :  { %923 = vsyncadd [#allocation4], 4294967264 }
 0x5c3   :  { %924 = dma.done.wait [#allocation15], 64  }
 0x5c4   :  { %925 = vsyncadd [#allocation15], 4294967232 }
 0x5c5   :  { %595 = vsyncpa [#allocation3], 1 }
 0x5c6   :  { %596 = vsyncpa [#allocation6], 1 }
 0x5c7   :  { %597 = vsyncpa [#allocation9], 1 }
 0x5c8   :  { %598 = vsyncpa [#allocation12], 1 }
 0x5c9   :  { %599 = vsyncpa [#allocation4], 1 }
 0x5ca   :  { %600 = vsyncpa [#allocation15], 1 }

// kernel: tpu_custom_call.1
= control target key start
LH: loop header
LB: loop body
LE: loop exit
PB: predicated region body
PF: predicated region fallthrough
CT: control target
= control target key end

     0   :  { %14 = vsyncpa [#allocation3], 0  ;;  %s1185_s0 = inlined_call_operand.hbm [shape: f32[2,32], index: 0, kind: input, shape index: {}]   ;;  %s1186_s1 = inlined_call_operand.hbm [shape: f32[2,8,32], index: 1, kind: input, shape index: {}]   ;;  %s1187_s2 = inlined_call_operand.hbm [shape: f32[2,8], index: 2, kind: input, shape index: {}]   ;;  %s1188_s3 = inlined_call_operand.hbm [shape: f32[32,32], index: 3, kind: input, shape index: {}]   ;;  %s1189_s4 = inlined_call_operand.hbm [shape: f32[32,32], index: 4, kind: input, shape index: {}]   ;;  %s1190_s5 = inlined_call_operand.hbm [shape: f32[32,32], index: 5, kind: input, shape index: {}]   ;;  %s1191_s6 = inlined_call_operand.hbm [shape: f32[2,32], index: 6, kind: output, shape index: {0}]   ;;  %s1192_s7 = inlined_call_operand.hbm [shape: f32[2,32], index: 7, kind: output, shape index: {1}]   ;;  %s1193_s8 = inlined_call_operand.hbm [shape: f32[2,8], index: 8, kind: output, shape index: {2}]  }
   0x1   :  { %15 = vsyncpa [#allocation6], 0 }
   0x2   :  { %16 = vsyncpa [#allocation9], 0 }
   0x3   :  { %17 = vsyncpa [#allocation12], 0 }
   0x4   :  { %18 = vsyncpa [#allocation4], 0 }
   0x5   :  { %19 = vsyncpa [#allocation15], 0  ;;  %s926_s27 = smov [#allocation5]   ;;  %s716_s9 = scalar_lea.hbm %s1186_s1, 256 }
   0x6   :  { %s35_s28 = sshll.u32 %s926_s27, 4  ;;  %p717_p0 = scmp.ne.s32.totalorder %s1186_s1, %s716_s9  ;;  %s36_s28 = int_to_ptr.vmem [resolvable:$true] %s35_s28 }
   0x7   :  { %p720_p1 = scmp.lt.u32.totalorder %s716_s9, %s1186_s1 }
   0x9   :  { %p722_p2 = pnand %p720_p1, %p717_p0 }
   0xb   :  { %725 = shalt.err (!%p722_p2)
}
   0xc   :  { %s726_s14 = scalar_lea.vmem %s36_s28, 256  ;;  %p731_p4 = scmp.lt.s32.totalorder %s36_s28, %s36_s28 }
   0xd   :  { %p727_p3 = scmp.ne.s32.totalorder %s36_s28, %s726_s14  ;;  %p732_p5 = scmp.lt.s32.totalorder %s726_s14, %s726_s14 }
   0xf   :  { %p733_p6 = por %p732_p5, %p731_p4 }
  0x11   :  { %p734_p7 = pnand %p733_p6, %p727_p3 }
  0x13   :  { %737 = shalt.err (!%p734_p7)
}
  0x14   :  { %s927_s15 = smov 128   ;;  %s928_s16 = smov 8  }
  0x15   :  { %41 = dma.hbm_to_vmem [thread:$0]  %s1186_s1, 256, %s36_s28, [#allocation6], %s927_s15, %s927_s15, %s928_s16  }
  0x16   :  { %s929_s19 = smov [#allocation8]   ;;  %s930_s21 = smov [#allocation2]  }
  0x17   :  { %s57_s20 = sshll.u32 %s929_s19, 4  ;;  %s26_s22 = sshll.u32 %s930_s21, 4  ;;  %s58_s20 = int_to_ptr.vmem [resolvable:$true] %s57_s20  ;;  %s27_s22 = int_to_ptr.vmem [resolvable:$true] %s26_s22 }
  0x18   :  { %s738_s25 = scalar_lea.hbm %s1188_s3, 512 }
  0x19   :  { %p739_p8 = scmp.ne.s32.totalorder %s1188_s3, %s738_s25  ;;  %p742_p9 = scmp.lt.u32.totalorder %s738_s25, %s1188_s3 }
  0x1b   :  { %p744_p10 = pnand %p742_p9, %p739_p8 }
  0x1d   :  { %747 = shalt.err (!%p744_p10)
}
  0x1e   :  { %s748_s1 = scalar_lea.vmem %s58_s20, 512  ;;  %p753_p12 = scmp.lt.s32.totalorder %s58_s20, %s58_s20 }
  0x1f   :  { %p749_p11 = scmp.ne.s32.totalorder %s58_s20, %s748_s1  ;;  %p754_p13 = scmp.lt.s32.totalorder %s748_s1, %s748_s1 }
  0x21   :  { %p755_p0 = por %p754_p13, %p753_p12 }
  0x23   :  { %p756_p1 = pnand %p755_p0, %p749_p11 }
  0x25   :  { %759 = shalt.err (!%p756_p1)
}
  0x26   :  { %63 = dma.hbm_to_vmem [thread:$0]  %s1188_s3, 512, %s58_s20, [#allocation9], %s927_s15, %s927_s15, %s928_s16  }
  0x27   :  { %s760_s12 = scalar_lea.hbm %s1185_s0, 32 }
  0x28   :  { %p761_p2 = scmp.ne.s32.totalorder %s1185_s0, %s760_s12  ;;  %p764_p3 = scmp.lt.u32.totalorder %s760_s12, %s1185_s0 }
  0x2a   :  { %p766_p4 = pnand %p764_p3, %p761_p2 }
  0x2c   :  { %769 = shalt.err (!%p766_p4)
}
  0x2d   :  { %s770_s19 = scalar_lea.vmem %s27_s22, 32  ;;  %p775_p6 = scmp.lt.s32.totalorder %s27_s22, %s27_s22 }
  0x2e   :  { %p771_p5 = scmp.ne.s32.totalorder %s27_s22, %s770_s19  ;;  %p776_p7 = scmp.lt.s32.totalorder %s770_s19, %s770_s19 }
  0x30   :  { %p777_p8 = por %p776_p7, %p775_p6 }
  0x32   :  { %p778_p9 = pnand %p777_p8, %p771_p5 }
  0x34   :  { %781 = shalt.err (!%p778_p9)
}
  0x35   :  { %29 = dma.hbm_to_vmem [thread:$0]  %s1185_s0, 32, %s27_s22, [#allocation3]  }
  0x36   :  { %s931_s21 = smov [#allocation7]   ;;  %s932_s24 = smov [#allocation10]  }
  0x37   :  { %s48_s23 = sshll.u32 %s931_s21, 4  ;;  %s69_s25 = sshll.u32 %s932_s24, 4  ;;  %s49_s23 = int_to_ptr.vmem [resolvable:$true] %s48_s23  ;;  %s70_s25 = int_to_ptr.vmem [resolvable:$true] %s69_s25 }
  0x38   :  { %s782_s29 = scalar_lea.hbm %s1187_s2, 32 }
  0x39   :  { %p783_p10 = scmp.ne.s32.totalorder %s1187_s2, %s782_s29  ;;  %p786_p11 = scmp.lt.u32.totalorder %s782_s29, %s1187_s2 }
  0x3b   :  { %p788_p12 = pnand %p786_p11, %p783_p10 }
  0x3d   :  { %791 = shalt.err (!%p788_p12)
}
  0x3e   :  { %s792_s0 = scalar_lea.vmem %s49_s23, 32  ;;  %p797_p0 = scmp.lt.s32.totalorder %s49_s23, %s49_s23 }
  0x3f   :  { %p793_p13 = scmp.ne.s32.totalorder %s49_s23, %s792_s0  ;;  %p798_p1 = scmp.lt.s32.totalorder %s792_s0, %s792_s0 }
  0x41   :  { %p799_p2 = por %p798_p1, %p797_p0 }
  0x43   :  { %p800_p3 = pnand %p799_p2, %p793_p13 }
  0x45   :  { %803 = shalt.err (!%p800_p3)
}
  0x46   :  { %51 = dma.hbm_to_vmem [thread:$0]  %s1187_s2, 32, %s49_s23, [#allocation6]  }
  0x47   :  { %s804_s13 = scalar_lea.hbm %s1189_s4, 512 }
  0x48   :  { %p805_p4 = scmp.ne.s32.totalorder %s1189_s4, %s804_s13  ;;  %p808_p5 = scmp.lt.u32.totalorder %s804_s13, %s1189_s4 }
  0x4a   :  { %p810_p6 = pnand %p808_p5, %p805_p4 }
  0x4c   :  { %813 = shalt.err (!%p810_p6)
}
  0x4d   :  { %s814_s3 = scalar_lea.vmem %s70_s25, 512  ;;  %p819_p8 = scmp.lt.s32.totalorder %s70_s25, %s70_s25 }
  0x4e   :  { %p815_p7 = scmp.ne.s32.totalorder %s70_s25, %s814_s3  ;;  %p820_p9 = scmp.lt.s32.totalorder %s814_s3, %s814_s3 }
  0x50   :  { %p821_p10 = por %p820_p9, %p819_p8 }
  0x52   :  { %p822_p11 = pnand %p821_p10, %p815_p7 }
  0x54   :  { %825 = shalt.err (!%p822_p11)
}
  0x55   :  { %75 = dma.hbm_to_vmem [thread:$0]  %s1189_s4, 512, %s70_s25, [#allocation9], %s927_s15, %s927_s15, %s928_s16  }
  0x56   :  { %s933_s21 = smov [#allocation11]   ;;  %s826_s27 = scalar_lea.hbm %s1190_s5, 512 }
  0x57   :  { %s81_s23 = sshll.u32 %s933_s21, 4  ;;  %p827_p12 = scmp.ne.s32.totalorder %s1190_s5, %s826_s27  ;;  %s82_s23 = int_to_ptr.vmem [resolvable:$true] %s81_s23 }
  0x58   :  { %p830_p13 = scmp.lt.u32.totalorder %s826_s27, %s1190_s5 }
  0x5a   :  { %p832_p0 = pnand %p830_p13, %p827_p12 }
  0x5c   :  { %835 = shalt.err (!%p832_p0)
}
  0x5d   :  { %s836_s9 = scalar_lea.vmem %s82_s23, 512  ;;  %p841_p2 = scmp.lt.s32.totalorder %s82_s23, %s82_s23 }
  0x5e   :  { %p837_p1 = scmp.ne.s32.totalorder %s82_s23, %s836_s9  ;;  %p842_p3 = scmp.lt.s32.totalorder %s836_s9, %s836_s9 }
  0x60   :  { %p843_p4 = por %p842_p3, %p841_p2 }
  0x62   :  { %p844_p5 = pnand %p843_p4, %p837_p1 }
  0x64   :  { %847 = shalt.err (!%p844_p5)
}
  0x65   :  { %87 = dma.hbm_to_vmem [thread:$0]  %s1190_s5, 512, %s82_s23, [#allocation12], %s927_s15, %s927_s15, %s928_s16  }
  0x66   :  { %914 = dma.done.wait [#allocation3], 32  }
  0x67   :  { %915 = vsyncadd [#allocation3], 4294967264 }
  0x68   :  { %916 = dma.done.wait [#allocation6], 288  }
  0x69   :  { %917 = vsyncadd [#allocation6], 4294967008 }
  0x6a   :  { %918 = dma.done.wait [#allocation9], 1024  }
  0x6b   :  { %919 = vsyncadd [#allocation9], 4294966272 }
  0x6c   :  { %920 = dma.done.wait [#allocation12], 512  }
  0x6d   :  { %921 = vsyncadd [#allocation12], 4294966784  ;;  %v934_v0 = vmov 0.0|0.0   ;;  %vm935_vm0 = vmmov 0   ;;  %v936_v1 = vmov 0.0   ;;  %vm122_vm1 = vcmask 261120  }
  0x6e   :  { %664 = vmatprep.subr.bf16.mxu0 %v934_v0  ;;  %639 = vmatprep.mubr.msk.f32.mxu0 %vm935_vm0, %v936_v1  ;;  %v110_v2 = vld [vmem:[#allocation8] sm:$0xff]  ;;  %v111_v3 = vld [vmem:[#allocation8 + $0x8] sm:$0xff]  ;;  %vm1079_vm2 = vmpackc.low %vm122_vm1, %vm122_vm1  ;;  %v212_v10 = vlaneseq  ;;  %v937_v17 = vmov 1966171168   ;;  %v938_v35 = vmov 0   ;;  %vm286_vm3 = vcmask 1041409  }
  0x6f   :  { %672 = vmatprep.subr.bf16.mxu1 %v934_v0  ;;  %650 = vmatprep.mubr.msk.f32.mxu1 %vm935_vm0, %v936_v1  ;;  %v665_v5 = vpack.c.bf16 %v111_v3, %v110_v2  ;;  %v112_v6 = vld [vmem:[#allocation8 + $0x10] sm:$0xff]  ;;  %v113_v7 = vld [vmem:[#allocation8 + $0x18] sm:$0xff]  ;;  %v1088_v9 = vld [vmem:[#allocation2] sm:$0x3]  ;;  %v210_v18 = vunpack.c.l.s4 %v937_v17  ;;  %vm289_vm4 = vcmask 58368   ;;  %vm542_vm5 = vcmask 254976  }
  0x70   :  { %v669_v8 = vpack.c.bf16 %v113_v7, %v112_v6  ;;  %v213_v11 = vshrl.u32 %v212_v10, 7  ;;  %v109_v13 = vld [vmem:[#allocation7] sm:$0x3]  ;;  %v1098_v26 = vld [vmem:[#allocation5] sm:$0xff]  ;;  %v1101_v29 = vld [vmem:[#allocation5 + $0x8] sm:$0xff]  ;;  %706 = vset.pattern.permute.xlu0 %v938_v35  ;;  %707 = vset.pattern.permute.xlu1 %v938_v35  ;;  %v277_v42 = vand.u32 127, %v212_v10 }
  0x71   :  { %667 = vmatpush3.bf16.xpose.msk.msra.mxu0 %vm1079_vm2, %v665_v5  ;;  %v211_v19 = vunpack.c.0.s8 %v210_v18  ;;  %v118_v3 = vld [vmem:[#allocation11] sm:$0xff]  ;;  %v119_v5 = vld [vmem:[#allocation11 + $0x8] sm:$0xff]  ;;  %v120_v7 = vld [vmem:[#allocation11 + $0x10] sm:$0xff]  ;;  %s939_s5 = smov [#allocation13]  }
  0x72   :  { %668 = vmatprep.subr.bf16.mxu0 %v934_v0  ;;  %v1092_v12 = vsub.s32 0, %v213_v11  ;;  %v1094_v14 = vsub.s32 1, %v213_v11  ;;  %v1108_v43 = vsub.s32 %v277_v42, %v213_v11  ;;  %v673_v6 = vpack.c.bf16 %v119_v5, %v118_v3  ;;  %s562_s15 = sshll.u32 %s939_s5, 4  ;;  %s563_s15 = int_to_ptr.vmem [resolvable:$true] %s562_s15 }
  0x73   :  { %v214_v20 = vsub.s32 %v211_v19, %v213_v11  ;;  %v114_v19 = vld [vmem:[#allocation10] sm:$0xff]  ;;  %s848_s16 = scalar_lea.vmem %s563_s15, 32  ;;  %p853_p7 = scmp.lt.s32.totalorder %s563_s15, %s563_s15 }
  0x74   :  { %v253_v15 = vrot.slane %v109_v13, %v1092_v12  ;;  %v260_v16 = vrot.slane %v109_v13, %v1094_v14  ;;  %675 = vmatpush3.bf16.xpose.msk.msra.mxu1 %vm1079_vm2, %v673_v6  ;;  %p849_p6 = scmp.ne.s32.totalorder %s563_s15, %s848_s16  ;;  %p854_p8 = scmp.lt.s32.totalorder %s848_s16, %s848_s16 }
  0x75   :  { %676 = vmatprep.subr.bf16.mxu1 %v934_v0 }
  0x76   :  { %255 = vbcast.lane.b32.xlu1 %v253_v15, 256  ;;  %p855_p9 = por %p854_p8, %p853_p7 }
  0x78   :  { %p856_p10 = pnand %p855_p9, %p849_p6 }
  0x79   :  { %671 = vmatpush3.bf16.xpose.msk.msra.mxu0 %vm1079_vm2, %v669_v8  ;;  %v121_v8 = vld [vmem:[#allocation11 + $0x18] sm:$0xff] }
  0x7a   :  { %262 = vbcast.lane.b32.xlu1 %v260_v16, 256  ;;  %v677_v10 = vpack.c.bf16 %v121_v8, %v120_v7 }
  0x7c   :  { %679 = vmatpush3.bf16.xpose.msk.msra.mxu1 %vm1079_vm2, %v677_v10 }
  0x7d   :  { %680 = vmatprep.subr.bf16.mxu1 %v934_v0 }
  0x80   :  { %640 = vmatmul.mubr.msk.f32.vlgmr.msra.gmra.mrb[0].mxu0 %vm122_vm1, %v1088_v9 }
  0x83   :  { %651 = vmatmul.mubr.msk.f32.vlgmr.msra.gmra.mrb[0].mxu1 %vm122_vm1, %v1088_v9  ;;  %v117_v9 = vld [vmem:[#allocation10 + $0x18] sm:$0xff] }
  0x84   :  { %661 = vmatprep.mubr.msk.f32.mxu1 %vm935_vm0, %v936_v1  ;;  %v116_v1 = vld [vmem:[#allocation10 + $0x10] sm:$0xff] }
  0xe8   :  { %v256_v36 = vpop.permute.xlu1 %255 }
  0xec   :  { %v263_v39 = vpop.permute.xlu1 %262 }
 0x153   :  { %v204_v21 = vpop.f32.mrb[0].mxu0 }
 0x154   :  { %v215_v22 = vrot.slane %v204_v21, %v214_v20  ;;  %v641_v23 = vpop.f32.mrb[1].mxu0 }
 0x156   :  { %v216_v24 = vcombine.high %v215_v22, %v215_v22  ;;  %v223_v25 = vrot.slane %v215_v22, %v214_v20  ;;  %v685_v22 = vpack.c.bf16 %v117_v9, %v116_v1 }
 0x158   :  { %v230_v27 = vrot.slane %v216_v24, %v214_v20  ;;  %v234_v28 = vrot.slane %v223_v25, %v1092_v12  ;;  %v115_v20 = vld [vmem:[#allocation10 + $0x8] sm:$0xff] }
 0x159   :  { %v681_v21 = vpack.c.bf16 %v115_v20, %v114_v19 }
 0x15a   :  { %v241_v30 = vmul.f32 %v234_v28, %v1098_v26  ;;  %v238_v31 = vrot.slane %v230_v27, %v1092_v12 }
 0x15b   :  { %683 = vmatpush3.bf16.xpose.msk.msra.mxu1 %vm1079_vm2, %v681_v21 }
 0x15c   :  { %v243_v32 = vsel %vm122_vm1, %v241_v30, 0.0  ;;  %v242_v33 = vmul.f32 %v238_v31, %v1101_v29  ;;  %684 = vmatprep.subr.bf16.mxu1 %v934_v0 }
 0x15d   :  { %244 = vadd.xlane.f32.xlu0 %v243_v32 }
 0x15e   :  { %v246_v34 = vsel %vm122_vm1, %v242_v33, 0.0 }
 0x161   :  { %247 = vadd.xlane.f32.xlu0 %v246_v34 }
 0x163   :  { %687 = vmatpush3.bf16.xpose.msk.msra.mxu1 %vm1079_vm2, %v685_v22 }
 0x1ea   :  { %v245_v37 = vpop.xlane.xlu0 %244 }
 0x1eb   :  { %v266_v38 = vadd.f32 %v256_v36, %v245_v37 }
 0x1ed   :  { %271 = vperm.xlu0 %706, %v266_v38  }
 0x1ee   :  { %v248_v40 = vpop.xlane.xlu0 %247 }
 0x1ef   :  { %v267_v41 = vadd.f32 %v263_v39, %v248_v40 }
 0x1f1   :  { %274 = vperm.xlu1 %707, %v267_v41  }
 0x26c   :  { %v272_v44 = vpop.permute.xlu0 %271 }
 0x26d   :  { %v281_v46 = vrot.slane %v272_v44, %v1108_v43 }
 0x270   :  { %v275_v45 = vpop.permute.xlu1 %274 }
 0x271   :  { %v285_v47 = vrot.slane %v275_v45, %v1108_v43 }
 0x273   :  { %v287_v48 = vsel %vm286_vm3, %v285_v47, %v281_v46 }
 0x274   :  { %v290_v49 = vsel %vm289_vm4, %v287_v48, -inf }
 0x275   :  { %291 = vmax.xlane.f32.xlu1 %v290_v49 }
 0x302   :  { %v292_v50 = vpop.xlane.xlu1 %291 }
 0x303   :  { %v297_v51 = vrot.slane %v292_v50, %v1092_v12  ;;  %v301_v52 = vrot.slane %v292_v50, %v1094_v14 }
 0x305   :  { %v304_v53 = vsub.f32 %v266_v38, %v297_v51  ;;  %v305_v54 = vsub.f32 %v267_v41, %v301_v52 }
 0x307   :  { %v306_v55 = vmul.f32 1.442695, %v304_v53  ;;  %v308_v56 = vmul.f32 1.442695, %v305_v54 }
 0x309   :  { %708 = vpow2.f32 %v306_v55 }
 0x30a   :  { %710 = vpow2.f32 %v308_v56 }
 0x313   :  { %v709_v57 = vpop.eup %708 }
 0x314   :  { %v711_v58 = vpop.eup %710  ;;  %313 = vperm.xlu1 %707, %v709_v57  }
 0x315   :  { %316 = vperm.xlu0 %706, %v711_v58  }
 0x393   :  { %v314_v59 = vpop.permute.xlu1 %313 }
 0x394   :  { %v317_v60 = vpop.permute.xlu0 %316  ;;  %v321_v61 = vrot.slane %v314_v59, %v1108_v43 }
 0x395   :  { %v325_v62 = vrot.slane %v317_v60, %v1108_v43 }
 0x397   :  { %v326_v63 = vsel %vm286_vm3, %v325_v62, %v321_v61 }
 0x398   :  { %v328_v2 = vsel %vm289_vm4, %v326_v63, 0.0 }
 0x399   :  { %329 = vadd.xlane.f32.xlu0 %v328_v2 }
 0x426   :  { %v330_v11 = vpop.xlane.xlu0 %329 }
 0x427   :  { %712 = vrcp.f32 %v330_v11 }
 0x431   :  { %v713_v13 = vpop.eup %712 }
 0x432   :  { %v336_v15 = vrot.slane %v713_v13, %v1092_v12  ;;  %v340_v17 = vrot.slane %v713_v13, %v1094_v14 }
 0x434   :  { %v343_v16 = vmul.f32 %v709_v57, %v336_v15  ;;  %v344_v18 = vmul.f32 %v711_v58, %v340_v17 }
 0x436   :  { %347 = vperm.xlu1 %707, %v343_v16  }
 0x43a   :  { %352 = vperm.xlu1 %707, %v344_v18  }
 0x4b5   :  { %v348_v12 = vpop.permute.xlu1 %347 }
 0x4b6   :  { %v355_v14 = vmul.f32 %v348_v12, %v1098_v26  ;;  %v548_v27 = vrot.slane %v348_v12, %v1108_v43 }
 0x4b8   :  { %v357_v23 = vsel %vm122_vm1, %v355_v14, 0.0 }
 0x4b9   :  { %v358_v24 = vrot.slane %v357_v23, 4  ;;  %v353_v25 = vpop.permute.xlu1 %352 }
 0x4ba   :  { %v356_v28 = vmul.f32 %v353_v25, %v1101_v29  ;;  %v552_v30 = vrot.slane %v353_v25, %v1108_v43 }
 0x4bb   :  { %v359_v0 = vadd.f32 %v358_v24, %v357_v23 }
 0x4bc   :  { %v364_v31 = vsel %vm122_vm1, %v356_v28, 0.0  ;;  %v553_v32 = vsel %vm286_vm3, %v552_v30, %v548_v27 }
 0x4bd   :  { %v360_v4 = vrot.slane %v359_v0, 2  ;;  %v365_v33 = vrot.slane %v364_v31, 4  ;;  %555 = vst.msk [vmem:[#allocation16] sm:$0x3] %vm289_vm4, %v553_v32 }
 0x4bf   :  { %v361_v26 = vadd.f32 %v360_v4, %v359_v0  ;;  %v366_v34 = vadd.f32 %v365_v33, %v364_v31 }
 0x4c1   :  { %v367_v35 = vrot.slane %v366_v34, 2  ;;  %v362_v36 = vrot.slane %v361_v26, 1 }
 0x4c3   :  { %v368_v37 = vadd.f32 %v367_v35, %v366_v34  ;;  %v363_v39 = vadd.f32 %v362_v36, %v361_v26 }
 0x4c5   :  { %v369_v38 = vrot.slane %v368_v37, 1 }
 0x4c7   :  { %v370_v40 = vadd.f32 %v369_v38, %v368_v37 }
 0x4c9   :  { %v455_v29 = vsel %vm286_vm3, %v370_v40, %v363_v39 }
 0x4ca   :  { %662 = vmatmul.mubr.msk.f32.vlgmr.msra.gmra.mrb[0].mxu1 %vm122_vm1, %v455_v29  ;;  %543 = vst.msk [vmem:[#allocation13] sm:$0x3] %vm542_vm5, %v455_v29 }
 0x4cb   :  { %859 = shalt.err (!%p856_p10)
}
 0x4cc   :  { %s860_s10 = scalar_lea.hbm %s1191_s6, 32 }
 0x4cd   :  { %p861_p11 = scmp.ne.s32.totalorder %s1191_s6, %s860_s10  ;;  %p864_p12 = scmp.lt.u32.totalorder %s860_s10, %s1191_s6 }
 0x4cf   :  { %p866_p13 = pnand %p864_p12, %p861_p11 }
 0x4d1   :  { %869 = shalt.err (!%p866_p13)
}
 0x4d2   :  { %565 = dma.vmem_to_hbm [thread:$0]  %s563_s15, 32, %s1191_s6, [#allocation4]  }
 0x4d3   :  { %s940_s19 = smov [#allocation14]   ;;  %s941_s2 = smov [#allocation16]  }
 0x4d4   :  { %s572_s3 = sshll.u32 %s940_s19, 4  ;;  %s582_s20 = sshll.u32 %s941_s2, 4  ;;  %s573_s3 = int_to_ptr.vmem [resolvable:$true] %s572_s3  ;;  %s583_s20 = int_to_ptr.vmem [resolvable:$true] %s582_s20 }
 0x4d5   :  { %s870_s21 = scalar_lea.vmem %s573_s3, 32  ;;  %p875_p1 = scmp.lt.s32.totalorder %s573_s3, %s573_s3 }
 0x4d6   :  { %p871_p0 = scmp.ne.s32.totalorder %s573_s3, %s870_s21  ;;  %p876_p2 = scmp.lt.s32.totalorder %s870_s21, %s870_s21 }
 0x4d8   :  { %p877_p3 = por %p876_p2, %p875_p1 }
 0x4da   :  { %p878_p4 = pnand %p877_p3, %p871_p0 }
 0x59d   :  { %v536_v41 = vpop.f32.mrb[0].mxu1 }
 0x59e   :  { %714 = vtanh.f32 %v536_v41  ;;  %v663_v42 = vpop.f32.mrb[1].mxu1 }
 0x5a8   :  { %v715_v43 = vpop.eup %714 }
 0x5a9   :  { %544 = vst.msk [vmem:[#allocation14] sm:$0x3] %vm542_vm5, %v715_v43 }
 0x5aa   :  { %881 = shalt.err (!%p878_p4)
}
 0x5ab   :  { %s882_s24 = scalar_lea.hbm %s1192_s7, 32 }
 0x5ac   :  { %p883_p5 = scmp.ne.s32.totalorder %s1192_s7, %s882_s24  ;;  %p886_p6 = scmp.lt.u32.totalorder %s882_s24, %s1192_s7 }
 0x5ae   :  { %p888_p7 = pnand %p886_p6, %p883_p5 }
 0x5b0   :  { %891 = shalt.err (!%p888_p7)
}
 0x5b1   :  { %575 = dma.vmem_to_hbm [thread:$0]  %s573_s3, 32, %s1192_s7, [#allocation15]  }
 0x5b2   :  { %s892_s9 = scalar_lea.vmem %s583_s20, 32  ;;  %p897_p9 = scmp.lt.s32.totalorder %s583_s20, %s583_s20 }
 0x5b3   :  { %p893_p8 = scmp.ne.s32.totalorder %s583_s20, %s892_s9  ;;  %p898_p10 = scmp.lt.s32.totalorder %s892_s9, %s892_s9 }
 0x5b5   :  { %p899_p11 = por %p898_p10, %p897_p9 }
 0x5b7   :  { %p900_p12 = pnand %p899_p11, %p893_p8 }
 0x5b9   :  { %903 = shalt.err (!%p900_p12)
}
 0x5ba   :  { %s904_s5 = scalar_lea.hbm %s1193_s8, 32 }
 0x5bb   :  { %p905_p13 = scmp.ne.s32.totalorder %s1193_s8, %s904_s5  ;;  %p908_p0 = scmp.lt.u32.totalorder %s904_s5, %s1193_s8 }
 0x5bd   :  { %p910_p1 = pnand %p908_p0, %p905_p13 }
 0x5bf   :  { %913 = shalt.err (!%p910_p1)
}
 0x5c0   :  { %585 = dma.vmem_to_hbm [thread:$0]  %s583_s20, 32, %s1193_s8, [#allocation15]  }
 0x5c1   :  { %922 = dma.done.wait [#allocation4], 32  }
 0x5c2   :  { %923 = vsyncadd [#allocation4], 4294967264 }
 0x5c3   :  { %924 = dma.done.wait [#allocation15], 64  }
 0x5c4   :  { %925 = vsyncadd [#allocation15], 4294967232 }
 0x5c5   :  { %595 = vsyncpa [#allocation3], 1 }
 0x5c6   :  { %596 = vsyncpa [#allocation6], 1 }
 0x5c7   :  { %597 = vsyncpa [#allocation9], 1 }
 0x5c8   :  { %598 = vsyncpa [#allocation12], 1 }
 0x5c9   :  { %599 = vsyncpa [#allocation4], 1 }
 0x5ca   :  { %600 = vsyncpa [#allocation15], 1 }

</bundles_post_ra>
